<compile_context>
chip_gen: v6e
topology: v6e:2x2x1
jax: 0.10.0
libtpu: 0.0.40
codegen_flags: <defaults>
</compile_context>

<pallas_src>
from functools import partial

import jax
import jax.numpy as jnp
from jax.experimental import pallas as pl
from jax.experimental.pallas import tpu as pltpu


def _gem_kernel(p_ref, x_ref, o_ref, *, eps: float, inv_hw: float, int_p):
    # p_ref: SMEM (1,) f32 ; x_ref: VMEM (TILE_R, HW) ; o_ref: VMEM (TILE_R, 1)
    x = x_ref[...].astype(jnp.float32)
    x = jnp.maximum(x, eps)                      # clamp(min=eps)

    if int_p is not None:
        # p is a known small integer: pure-VPU power (no per-element EUP work).
        xp = x
        for _ in range(int_p - 1):
            xp = xp * x
    else:
        # General learnable p: x ** p = exp(p * log(x)), valid since x >= eps > 0.
        p = p_ref[0]
        xp = jnp.exp(p * jnp.log(x))

    # Mean over the full spatial extent (block spans all of H*W, so no padding
    # lanes contribute); keep the accumulation in f32.
    m = jnp.sum(xp, axis=-1, keepdims=True) * inv_hw

    inv_p = 1.0 / p_ref[0]                       # one scalar reciprocal per tile
    o_ref[...] = jnp.exp(jnp.log(m) * inv_p).astype(o_ref.dtype)


def _pick_tile_rows(rows: int, hw: int, itemsize: int,
                    vmem_budget_bytes: int = 8 * 1024 * 1024) -> int:
    """Largest multiple-of-8 row tile whose 2 double-buffered input copies fit
    the (conservative, v5e/v7x-safe) VMEM budget."""
    max_rows = max(8, vmem_budget_bytes // (2 * hw * itemsize))
    tile = min(rows, max_rows, 1024)
    tile = max(8, (tile // 8) * 8)
    return tile


def gem_pallas(x: jax.Array, p: jax.Array, eps: float = 1e-6,
               *, static_int_p: int | None = None) -> jax.Array:
    """GeM pooling. x: (B, C, H, W) NCHW. Returns (B, C, 1, 1).

    If `static_int_p` is given (e.g. 3), the element-wise power is done with
    repeated multiplies; it must match the runtime value of p.
    """
    if static_int_p is not None:
        assert isinstance(static_int_p, int) and static_int_p >= 1

    B, C, H, W = x.shape
    rows, hw = B * C, H * W
    xr = x.reshape(rows, hw)

    tile_r = _pick_tile_rows(rows, hw, x.dtype.itemsize)
    padded_rows = ((rows + tile_r - 1) // tile_r) * tile_r
    if padded_rows != rows:
        # Pad with 1.0 so log() in padded (discarded) rows stays well-defined.
        xr = jnp.pad(xr, ((0, padded_rows - rows), (0, 0)), constant_values=1.0)
    num_tiles = padded_rows // tile_r

    if static_int_p is not None:
        transcendentals = 2 * padded_rows                      # per-row log+exp only
        flops = (static_int_p + 2) * padded_rows * hw
    else:
        transcendentals = 2 * padded_rows * hw + 2 * padded_rows
        flops = 3 * padded_rows * hw
    bytes_accessed = (padded_rows * hw + padded_rows) * x.dtype.itemsize + 4

    out = pl.pallas_call(
        partial(_gem_kernel, eps=float(eps), inv_hw=1.0 / hw, int_p=static_int_p),
        out_shape=jax.ShapeDtypeStruct((padded_rows, 1), x.dtype),
        grid=(num_tiles,),
        in_specs=[
            pl.BlockSpec(memory_space=pltpu.SMEM),               # p (scalar param)
            pl.BlockSpec((tile_r, hw), lambda i: (i, 0)),        # x row tile
        ],
        out_specs=pl.BlockSpec((tile_r, 1), lambda i: (i, 0)),
        compiler_params=pltpu.CompilerParams(
            dimension_semantics=("parallel",),                   # megacore on v7x
        ),
        cost_estimate=pl.CostEstimate(
            flops=int(flops),
            transcendentals=int(transcendentals),
            bytes_accessed=int(bytes_accessed),
        ),
    )(p.astype(jnp.float32).reshape(1), xr)

    return out[:rows].reshape(B, C, 1, 1)


if __name__ == "__main__":
    key = jax.random.PRNGKey(0)
    B, C, H, W = 2, 4, 16, 16
    x = jax.random.normal(key, (B, C, H, W), dtype=jnp.float32)

    # Deterministic parameter init, matching nn.Parameter(torch.ones(1) * 3)
    p = jnp.ones((1,), dtype=jnp.float32) * 3.0
    eps = 1e-6

    # General (learnable-p) path — faithful to the PyTorch module semantics.
    y = gem_pallas(x, p, eps)
    jax.block_until_ready(y)

    # Fast path: p known to be the integer init (3) -> VPU-only power.
    y_fast = gem_pallas(x, p, eps, static_int_p=3)
    jax.block_until_ready(y_fast)

    # Pure-JAX reference check (same semantics as the PyTorch forward).
    ref = jnp.mean(jnp.maximum(x, eps) ** p[0], axis=(-2, -1), keepdims=True) ** (1.0 / p[0])
    assert y.shape == (B, C, 1, 1)
    assert jnp.allclose(y, ref, rtol=1e-4, atol=1e-5)
    assert jnp.allclose(y_fast, ref, rtol=1e-4, atol=1e-5)

    print("KERNEL_OK")
</pallas_src>

<mosaic_0001>
module attributes {stable_mosaic.version = 11 : i64} {
  func.func @_gem_kernel(%arg0: i32, %arg1: memref<1xf32, #tpu.memory_space<smem>>, %arg2: memref<8x256xf32, #tpu.memory_space<vmem>>, %arg3: memref<8x1xf32, #tpu.memory_space<vmem>>) attributes {dimension_semantics = [#tpu.dimension_semantics<parallel>], iteration_bounds = array<i64: 1>, scalar_prefetch = 0 : i64, scratch_operands = 0 : i64, tpu.core_type = #tpu.core_type<tc>, window_params = [{transform_indices = @transform_0, window_bounds = array<i64: 1>}, {transform_indices = @transform_1, window_bounds = array<i64: 8, 256>}, {transform_indices = @transform_2, window_bounds = array<i64: 8, 1>}]} {
    %c0 = arith.constant 0 : index
    %c0_0 = arith.constant 0 : index
    %0 = vector.load %arg2[%c0, %c0_0] : memref<8x256xf32, #tpu.memory_space<vmem>>, vector<8x256xf32>
    %cst = arith.constant 9.99999997E-7 : f32
    %1 = vector.broadcast %cst : f32 to vector<8x256xf32>
    %2 = arith.maximumf %0, %1 : vector<8x256xf32>
    %c0_1 = arith.constant 0 : index
    %3 = memref.load %arg1[%c0_1] : memref<1xf32, #tpu.memory_space<smem>>
    %4 = math.log %2 : vector<8x256xf32>
    %5 = vector.broadcast %3 : f32 to vector<8x256xf32>
    %6 = arith.mulf %5, %4 : vector<8x256xf32>
    %7 = math.exp %6 : vector<8x256xf32>
    %cst_2 = arith.constant dense<0.000000e+00> : vector<8xf32>
    %8 = vector.multi_reduction <add>, %7, %cst_2 [1] : vector<8x256xf32> to vector<8xf32>
    %9 = vector.shape_cast %8 : vector<8xf32> to vector<8x1xf32>
    %cst_3 = arith.constant 3.906250e-03 : f32
    %10 = vector.broadcast %cst_3 : f32 to vector<8x1xf32>
    %11 = arith.mulf %9, %10 : vector<8x1xf32>
    %c0_4 = arith.constant 0 : index
    %12 = memref.load %arg1[%c0_4] : memref<1xf32, #tpu.memory_space<smem>>
    %cst_5 = arith.constant 1.000000e+00 : f32
    %13 = arith.divf %cst_5, %12 : f32
    %14 = math.log %11 : vector<8x1xf32>
    %15 = vector.broadcast %13 : f32 to vector<8x1xf32>
    %16 = arith.mulf %14, %15 : vector<8x1xf32>
    %17 = math.exp %16 : vector<8x1xf32>
    %c0_6 = arith.constant 0 : index
    %c0_7 = arith.constant 0 : index
    %18 = vector.load %arg3[%c0_6, %c0_7] : memref<8x1xf32, #tpu.memory_space<vmem>>, vector<8x1xf32>
    tpu.vector_store %arg3[%c0_6, %c0_7], %17 {strides = array<i32>} : memref<8x1xf32, #tpu.memory_space<vmem>>, vector<8x1xf32>,
    return
  }
  func.func @transform_0(%arg0: i32) -> i32 {
    %c0_i32 = arith.constant 0 : i32
    %c0_i32_0 = arith.constant 0 : i32
    return %c0_i32 : i32
  }
  func.func @transform_1(%arg0: i32) -> (i32, i32) {
    %c0_i32 = arith.constant 0 : i32
    %c0_i32_0 = arith.constant 0 : i32
    return %arg0, %c0_i32 : i32, i32
  }
  func.func @transform_2(%arg0: i32) -> (i32, i32) {
    %c0_i32 = arith.constant 0 : i32
    %c0_i32_0 = arith.constant 0 : i32
    return %arg0, %c0_i32 : i32, i32
  }
}

</mosaic_0001>

<bundles_post_ra>
// kernel: tpu_custom_call.1
= control target key start
LH: loop header
LB: loop body
LE: loop exit
PB: predicated region body
PF: predicated region fallthrough
CT: control target
= control target key end

     0   :  { %8 = vsyncpa [#allocation4], 0  ;;  %s99_s9 = smov [#allocation3]   ;;  %s124_s0 = inlined_call_operand.<no memory space> [shape: f32[1], index: 0, kind: input, shape index: {}]   ;;  %s125_s1 = inlined_call_operand.hbm [shape: f32[8,256], index: 1, kind: input, shape index: {}]   ;;  %s126_s2 = inlined_call_operand.vmem [shape: f32[8,1], index: 2, kind: output, shape index: {}]  }
   0x1   :  { %s17_s10 = sshll.u32 %s99_s9, 4  ;;  %s18_s10 = int_to_ptr.vmem [resolvable:$true] %s17_s10 }
   0x2   :  { %s85_s11 = scalar_lea.vmem %s18_s10, 256  ;;  %p90_p1 = scmp.lt.s32.totalorder %s18_s10, %s18_s10 }
   0x3   :  { %p86_p0 = scmp.ne.s32.totalorder %s18_s10, %s85_s11  ;;  %p91_p2 = scmp.lt.s32.totalorder %s85_s11, %s85_s11 }
   0x5   :  { %p92_p3 = por %p91_p2, %p90_p1 }
   0x7   :  { %p93_p4 = pnand %p92_p3, %p86_p0 }
   0x9   :  { %96 = shalt.err (!%p93_p4)
}
   0xa   :  { %20 = dma.hbm_to_vmem [thread:$0]  %s125_s1, 256, %s18_s10, [#allocation4]  }
   0xb   :  { %97 = dma.done.wait [#allocation4], 256  }
   0xc   :  { %98 = vsyncadd [#allocation4], 4294967040  ;;  %v33_v0 = vstv %s124_s0  ;;  %v24_v1 = vld [vmem:[#allocation3] sm:$0xff]  ;;  %v25_v2 = vld [vmem:[#allocation3 + $0x8] sm:$0xff]  ;;  %vm53_vm0 = vcmask 7168  }
   0xd   :  { %63 = vrcp.f32 %v33_v0  ;;  %v26_v3 = vmax.f32 %v24_v1, 1e-06  ;;  %v27_v4 = vmax.f32 %v25_v2, 1e-06 }
   0xf   :  { %65 = vlog2.f32 %v26_v3 }
  0x10   :  { %67 = vlog2.f32 %v27_v4 }
  0x1a   :  { %v64_v5 = vpop.eup %63 }
  0x1b   :  { %60 = vpush %v64_v5 }
  0x1c   :  { %v66_v6 = vpop.eup %65 }
  0x1d   :  { %v68_v7 = vpop.eup %67  ;;  %v30_v8 = vmul.f32 0.6931472, %v66_v6 }
  0x1e   :  { %v32_v9 = vmul.f32 0.6931472, %v68_v7 }
  0x1f   :  { %v34_v10 = vmul.f32 %v33_v0, %v30_v8 }
  0x20   :  { %v35_v11 = vmul.f32 %v33_v0, %v32_v9 }
  0x21   :  { %v36_v12 = vmul.f32 1.442695, %v34_v10 }
  0x22   :  { %v38_v13 = vmul.f32 1.442695, %v35_v11 }
  0x23   :  { %69 = vpow2.f32 %v36_v12 }
  0x24   :  { %71 = vpow2.f32 %v38_v13 }
  0x30   :  { %v70_v14 = vpop.eup %69 }
  0x31   :  { %v72_v15 = vpop.eup %71 }
  0x32   :  { %v40_v16 = vadd.f32 %v72_v15, %v70_v14 }
  0x34   :  { %41 = vadd.xlane.f32.xlu0 %v40_v16 }
  0x4c   :  { %s61_s0 = spop %60 }
  0x4d   :  { %v49_v20 = vstv %s61_s0 }
  0xbd   :  { %v42_v17 = vpop.xlane.xlu0 %41 }
  0xbe   :  { %v43_v18 = vmul.f32 0.00390625, %v42_v17 }
  0xc0   :  { %73 = vlog2.f32 %v43_v18 }
  0xcd   :  { %v74_v19 = vpop.eup %73 }
  0xce   :  { %v48_v21 = vmul.f32 0.6931472, %v74_v19 }
  0xd0   :  { %v50_v22 = vmul.f32 %v49_v20, %v48_v21 }
  0xd2   :  { %v51_v23 = vmul.f32 1.442695, %v50_v22 }
  0xd4   :  { %75 = vpow2.f32 %v51_v23 }
  0xe1   :  { %v76_v24 = vpop.eup %75 }
  0xe2   :  { %54 = vst.msk [vmem:[%s126_s2] sm:$0xff] %vm53_vm0, %v76_v24 }
  0xe3   :  { %59 = vsyncpa [#allocation4], 1 }

</bundles_post_ra>
